<compile_context>
chip_gen: v7x
topology: tpu7x:2x2x1
jax: 0.10.0
libtpu: 0.0.40
codegen_flags: <defaults>
</compile_context>

<pallas_src>
import functools

import jax
import jax.numpy as jnp
from jax.experimental import pallas as pl
from jax.experimental.pallas import tpu as pltpu


def _round_up(x, m):
    return (x + m - 1) // m * m


# -----------------------------------------------------------------------------
# Kernels.  Grid = (N, token-tiles, embed-tiles, contraction-tiles).
#   x_ref : (tk, tm)   channels x tokens   (x kept channel-major -> no HBM transpose)
#   w_ref : (tk, tn)   channels x embed    (bf16)
#   b_ref : (1,  tn)   bias (f32)
#   o_ref : (tm, tn)   tokens   x embed    (lane-dense in E)
# Contraction:  o += x_tile.T @ w_tile  (tile transpose = XLU work, overlapped).
# -----------------------------------------------------------------------------
def _proj_kernel_f32out(x_ref, w_ref, b_ref, o_ref, *, compute_dtype):
    # f32 output: accumulate straight into the (k-resident) output block.
    @pl.when(pl.program_id(3) == 0)
    def _init():
        # Bias-initialize instead of zero-fill + later bias add.
        o_ref[...] = jnp.broadcast_to(b_ref[...], o_ref.shape)

    xt = x_ref[...].T.astype(compute_dtype)        # (tm, tk) in compute dtype
    o_ref[...] += jnp.dot(xt, w_ref[...], preferred_element_type=jnp.float32)


def _proj_kernel_lowp_out(x_ref, w_ref, b_ref, o_ref, acc_ref, *, compute_dtype):
    # Low-precision output: keep an f32 VMEM accumulator, cast once at the end.
    k = pl.program_id(3)

    @pl.when(k == 0)
    def _init():
        acc_ref[...] = jnp.broadcast_to(b_ref[...].astype(jnp.float32),
                                        acc_ref.shape)

    xt = x_ref[...].T.astype(compute_dtype)
    acc_ref[...] += jnp.dot(xt, w_ref[...], preferred_element_type=jnp.float32)

    @pl.when(k == pl.num_programs(3) - 1)
    def _fin():
        o_ref[...] = acc_ref[...].astype(o_ref.dtype)


# -----------------------------------------------------------------------------
# Wrapper: (N, C, *spatial) in  ->  (N, prod(spatial), E) out
# -----------------------------------------------------------------------------
def mlp_forward(x, weight, bias, *, tm=512, tn_max=1024, tk_max=2048,
                compute_dtype=jnp.bfloat16):
    """
    x      : (N, C, *spatial)   e.g. (N, C, H, W)
    weight : (E, C)             nn.Linear weight
    bias   : (E,)               nn.Linear bias
    returns (N, prod(spatial), E), dtype == x.dtype
    """
    if x.ndim < 3:
        raise ValueError("expected x of shape (N, C, *spatial)")
    N, C = x.shape[0], x.shape[1]
    S = 1
    for d in x.shape[2:]:
        S *= d
    E = weight.shape[0]
    out_dtype = x.dtype

    # ---- layout plumbing (plain JAX, cheap) --------------------------------
    # Keep x channel-major (N, C, S): flatten(2) is a free contiguous reshape
    # and the (N, S, C) transpose is never materialized in HBM.
    xr = x.reshape(N, C, S)

    # ---- tile / padding selection -------------------------------------------
    # tokens: lane axis of the x tile / sublane axis of the out tile
    tm = min(tm, _round_up(S, 128))              # multiple of 128
    S_pad = _round_up(S, tm)
    # embed: lane axis of w / out -> multiples of 128 => unmasked vector stores
    E_pad = _round_up(E, 128)
    if E_pad <= tn_max:
        tn = E_pad                               # single embed block: x streamed once
    else:
        tn = 512
        E_pad = _round_up(E, tn)
    # channels (contraction): sublane axis of x / w -> multiple of 8
    C_pad = _round_up(C, 8)
    if C_pad <= tk_max:
        tk = C_pad                               # whole contraction per step
    else:
        tk = tk_max
        C_pad = _round_up(C, tk)
    nk = C_pad // tk

    # v7x has 2 TensorCores: ensure at least one parallel axis has >= 2 blocks.
    if N * (S_pad // tm) * (E_pad // tn) == 1:
        if tn % 256 == 0:
            tn //= 2
        elif tm % 256 == 0:
            tm //= 2

    # zero-padding (padded channels contribute 0; padded tokens/embeds sliced off)
    if (C_pad, S_pad) != (C, S):
        xr = jnp.pad(xr, ((0, 0), (0, C_pad - C), (0, S_pad - S)))
    w_ce = jnp.transpose(weight, (1, 0)).astype(compute_dtype)     # (C, E) bf16
    if (C_pad, E_pad) != (C, E):
        w_ce = jnp.pad(w_ce, ((0, C_pad - C), (0, E_pad - E)))
    b2 = bias.astype(jnp.float32).reshape(1, E)
    if E_pad != E:
        b2 = jnp.pad(b2, ((0, 0), (0, E_pad - E)))

    grid = (N, S_pad // tm, E_pad // tn, nk)

    f32_out = jnp.dtype(out_dtype) == jnp.dtype(jnp.float32)
    if f32_out:
        kernel = functools.partial(_proj_kernel_f32out, compute_dtype=compute_dtype)
        scratch = []
    else:
        kernel = functools.partial(_proj_kernel_lowp_out, compute_dtype=compute_dtype)
        scratch = [pltpu.VMEM((tm, tn), jnp.float32)]

    # VMEM footprint estimate (double-buffered tiles + scratch) and limits/hints.
    vmem_est = 2 * (tk * tm * xr.dtype.itemsize
                    + tk * tn * w_ce.dtype.itemsize
                    + tm * tn * jnp.dtype(out_dtype).itemsize
                    + tn * 4)
    if not f32_out:
        vmem_est += tm * tn * 4
    vmem_limit = int(min(48 * 2**20, max(32 * 2**20, 2 * vmem_est)))

    cost = pl.CostEstimate(
        flops=2 * N * S_pad * C_pad * E_pad,
        transcendentals=0,
        bytes_accessed=(N * C_pad * S_pad * xr.dtype.itemsize
                        + C_pad * E_pad * w_ce.dtype.itemsize
                        + N * S_pad * E_pad * jnp.dtype(out_dtype).itemsize),
    )

    out = pl.pallas_call(
        kernel,
        out_shape=jax.ShapeDtypeStruct((N, S_pad, E_pad), out_dtype),
        grid_spec=pltpu.PrefetchScalarGridSpec(
            num_scalar_prefetch=0,
            grid=grid,
            in_specs=[
                pl.BlockSpec((None, tk, tm), lambda n, i, j, k: (n, k, i)),  # x
                pl.BlockSpec((tk, tn), lambda n, i, j, k: (k, j)),           # w
                pl.BlockSpec((1, tn), lambda n, i, j, k: (0, j)),            # bias
            ],
            out_specs=pl.BlockSpec((None, tm, tn), lambda n, i, j, k: (n, i, j)),
            scratch_shapes=scratch,
        ),
        compiler_params=pltpu.CompilerParams(
            dimension_semantics=("parallel", "parallel", "parallel", "arbitrary"),
            vmem_limit_bytes=vmem_limit),
        cost_estimate=cost,
    )(xr, w_ce, b2)

    return out[:, :S, :E]


# -----------------------------------------------------------------------------
# Pure-JAX reference (for correctness check)
# -----------------------------------------------------------------------------
def mlp_reference(x, weight, bias):
    N, C = x.shape[0], x.shape[1]
    S = 1
    for d in x.shape[2:]:
        S *= d
    xt = jnp.transpose(x.reshape(N, C, S), (0, 2, 1))          # (N, S, C)
    return jnp.einsum("nsc,ec->nse", xt, weight,
                      precision=jax.lax.Precision.HIGHEST) + bias


if __name__ == "__main__":
    # Small, TPU-aligned shapes consistent with the module:
    # batch=2, input_dim=128 channels, 16x16 spatial (256 tokens), embed_dim=256
    N, C, H, W = 2, 128, 16, 16
    E = 256

    key = jax.random.PRNGKey(0)
    kx, kw, kb = jax.random.split(key, 3)

    x = jax.random.normal(kx, (N, C, H, W), jnp.float32)
    bound = 1.0 / (C ** 0.5)                      # nn.Linear default init range
    weight = jax.random.uniform(kw, (E, C), jnp.float32, -bound, bound)
    bias = jax.random.uniform(kb, (E,), jnp.float32, -bound, bound)

    out = jax.block_until_ready(mlp_forward(x, weight, bias))
    ref = mlp_reference(x, weight, bias)

    assert out.shape == (N, H * W, E), out.shape
    max_err = float(jnp.max(jnp.abs(out - ref)))
    # bf16 operands on the MXU with f32 accumulation -> ~1e-3 max error here.
    assert jnp.allclose(out, ref, atol=2e-2, rtol=2e-2), max_err

    print("KERNEL_OK")
</pallas_src>

<mosaic_0001>
module attributes {stable_mosaic.version = 11 : i64} {
  func.func @_proj_kernel_f32out(%arg0: i32, %arg1: i32, %arg2: i32, %arg3: i32, %arg4: memref<1x128x256xf32, #tpu.memory_space<vmem>>, %arg5: memref<128x256xbf16, #tpu.memory_space<vmem>>, %arg6: memref<1x256xf32, #tpu.memory_space<vmem>>, %arg7: memref<1x256x256xf32, #tpu.memory_space<vmem>>) attributes {dimension_semantics = [#tpu.dimension_semantics<parallel>, #tpu.dimension_semantics<parallel>, #tpu.dimension_semantics<parallel>, #tpu.dimension_semantics<arbitrary>], iteration_bounds = array<i64: 2, 1, 1, 1>, scalar_prefetch = 0 : i64, scratch_operands = 0 : i64, tpu.core_type = #tpu.core_type<tc>, window_params = [{transform_indices = @transform_0, window_bounds = array<i64: 1, 128, 256>}, {transform_indices = @transform_1, window_bounds = array<i64: 128, 256>}, {transform_indices = @transform_2, window_bounds = array<i64: 1, 256>}, {transform_indices = @transform_3, window_bounds = array<i64: 1, 256, 256>}]} {
    %c0_i32 = arith.constant 0 : i32
    %0 = arith.cmpi eq, %arg3, %c0_i32 : i32
    %1 = arith.extui %0 : i1 to i32
    %c0_i32_0 = arith.constant 0 : i32
    %2 = arith.cmpi ne, %1, %c0_i32_0 : i32
    scf.if %2 {
      %c0_11 = arith.constant 0 : index
      %c0_12 = arith.constant 0 : index
      %15 = vector.load %arg6[%c0_11, %c0_12] : memref<1x256xf32, #tpu.memory_space<vmem>>, vector<1x256xf32>
      %16 = vector.shape_cast %15 : vector<1x256xf32> to vector<1x256xf32>
      %17 = vector.broadcast %16 : vector<1x256xf32> to vector<256x256xf32>
      %c0_13 = arith.constant 0 : index
      %c0_14 = arith.constant 0 : index
      %c0_15 = arith.constant 0 : index
      %18 = vector.load %arg7[%c0_13, %c0_14, %c0_15] : memref<1x256x256xf32, #tpu.memory_space<vmem>>, vector<1x256x256xf32>
      %19 = vector.shape_cast %18 : vector<1x256x256xf32> to vector<256x256xf32>
      %20 = vector.shape_cast %17 : vector<256x256xf32> to vector<1x256x256xf32>
      tpu.vector_store %arg7[%c0_13, %c0_14, %c0_15], %20 {strides = array<i32>} : memref<1x256x256xf32, #tpu.memory_space<vmem>>, vector<1x256x256xf32>,
    } else {
    }
    %c0 = arith.constant 0 : index
    %c0_1 = arith.constant 0 : index
    %c0_2 = arith.constant 0 : index
    %3 = vector.load %arg4[%c0, %c0_1, %c0_2] : memref<1x128x256xf32, #tpu.memory_space<vmem>>, vector<1x128x256xf32>
    %4 = vector.shape_cast %3 : vector<1x128x256xf32> to vector<128x256xf32>
    %5 = tpu.transpose %4, [1, 0] : vector<128x256xf32> -> vector<256x128xf32>
    %6 = arith.truncf %5 : vector<256x128xf32> to vector<256x128xbf16>
    %c0_3 = arith.constant 0 : index
    %c0_4 = arith.constant 0 : index
    %c0_5 = arith.constant 0 : index
    %7 = vector.load %arg7[%c0_3, %c0_4, %c0_5] : memref<1x256x256xf32, #tpu.memory_space<vmem>>, vector<1x256x256xf32>
    %8 = vector.shape_cast %7 : vector<1x256x256xf32> to vector<256x256xf32>
    %c0_6 = arith.constant 0 : index
    %c0_7 = arith.constant 0 : index
    %9 = vector.load %arg5[%c0_6, %c0_7] : memref<128x256xbf16, #tpu.memory_space<vmem>>, vector<128x256xbf16>
    %cst = arith.constant dense<0.000000e+00> : vector<256x256xf32>
    %10 = tpu.matmul %6, %9, %cst {dimension_numbers = #tpu.dot_dimension_numbers<[1], [0], [0], [1], [0, 0, 1, 1], [], []>} : vector<256x128xbf16>, vector<128x256xbf16>, vector<256x256xf32> -> vector<256x256xf32>
    %11 = arith.addf %8, %10 : vector<256x256xf32>
    %c0_8 = arith.constant 0 : index
    %c0_9 = arith.constant 0 : index
    %c0_10 = arith.constant 0 : index
    %12 = vector.load %arg7[%c0_8, %c0_9, %c0_10] : memref<1x256x256xf32, #tpu.memory_space<vmem>>, vector<1x256x256xf32>
    %13 = vector.shape_cast %12 : vector<1x256x256xf32> to vector<256x256xf32>
    %14 = vector.shape_cast %11 : vector<256x256xf32> to vector<1x256x256xf32>
    tpu.vector_store %arg7[%c0_8, %c0_9, %c0_10], %14 {strides = array<i32>} : memref<1x256x256xf32, #tpu.memory_space<vmem>>, vector<1x256x256xf32>,
    return
  }
  func.func @transform_0(%arg0: i32, %arg1: i32, %arg2: i32, %arg3: i32) -> (i32, i32, i32) {
    %c0_i32 = arith.constant 0 : i32
    return %arg0, %arg3, %arg1 : i32, i32, i32
  }
  func.func @transform_1(%arg0: i32, %arg1: i32, %arg2: i32, %arg3: i32) -> (i32, i32) {
    %c0_i32 = arith.constant 0 : i32
    return %arg3, %arg2 : i32, i32
  }
  func.func @transform_2(%arg0: i32, %arg1: i32, %arg2: i32, %arg3: i32) -> (i32, i32) {
    %c0_i32 = arith.constant 0 : i32
    %c0_i32_0 = arith.constant 0 : i32
    return %c0_i32, %arg2 : i32, i32
  }
  func.func @transform_3(%arg0: i32, %arg1: i32, %arg2: i32, %arg3: i32) -> (i32, i32, i32) {
    %c0_i32 = arith.constant 0 : i32
    return %arg0, %arg1, %arg2 : i32, i32, i32
  }
}

</mosaic_0001>

<bundles_post_ra>
// kernel: tpu_custom_call.1
= control target key start
LH: loop header
LB: loop body
LE: loop exit
PB: predicated region body
PF: predicated region fallthrough
CT: control target
= control target key end

     0   :  { %8 = vsyncpa [#allocation3], 0  ;;  %s1950_s0 = inlined_call_operand.hbm [shape: f32[2,128,256], index: 0, kind: input, shape index: {}]   ;;  %s1951_s1 = inlined_call_operand.hbm [shape: bf16[128,256], index: 1, kind: input, shape index: {}]   ;;  %s1952_s2 = inlined_call_operand.vmem [shape: f32[1,256], index: 2, kind: input, shape index: {}]   ;;  %s1953_s3 = inlined_call_operand.hbm [shape: f32[2,256,256], index: 3, kind: output, shape index: {}]  }
   0x1   :  { %10 = vsyncpa [#allocation3 + $0x1], 0 }
   0x2   :  { %11 = vsyncpa [#allocation6], 0 }
   0x3   :  { %12 = vsyncpa [#allocation4], 0 }
   0x4   :  { %14 = vsyncpa [#allocation4 + $0x1], 0  ;;  %s1542_s12 = smov 0   ;;  %s1544_s13 = smov 0  }
   0x5   :  { %s1546_s14 = smov 0   ;;  %s1548_s15 = smov 0  }
   0x6   :  { %s1550_s16 = smov 0   ;;  %s1552_s17 = smov 0  }
   0x7 LB: > { %s1098_s18 = sadd.s32 4294967295, %s1510_s17   ;;  %s1099_s19 = sadd.s32 4294967294, %s1510_s17   ;;  %s1510_s17 = sphi %s1552_s17, %s20_s17   ;;  %s1506_s16 = sphi %s1550_s16, %s1977_s16   ;;  %s1502_s15 = sphi %s1548_s15, %s1976_s15   ;;  %s1498_s14 = sphi %s1546_s14, %s1975_s14   ;;  %s1494_s13 = sphi %s1544_s13, %s1974_s13   ;;  %s1490_s12 = sphi %s1542_s12, %s1973_s12  }
   0x8   : > { %p70_p0 = scmp.ne.s32.totalorder %s1494_s13, %s1490_s12  ;;  %p1576_p1 = scmp.eq.s32.totalorder %s1098_s18, 0 }
   0x9   : > { %p1580_p2 = scmp.eq.s32.totalorder %s1098_s18, 1  ;;  %p158_p3 = scmp.eq.s32.totalorder %s1099_s19, 1 }
   0xa   : > { %s1958_s20 = scalar_select %p1576_p1, 1, 0 }
   0xb   : > { %s1959_s21 = scalar_select %p1580_p2, 1, 0 }
   0xc   : > { %p1586_p4 = por %p1576_p1, %p70_p0  ;;  %p1100_p5 = scmp.ge.s32.totalorder %s1510_s17, 1 }
   0xd   : > { %p1591_p6 = por %p158_p3, %p70_p0  ;;  %p165_p7 = scmp.lt.s32.totalorder %s1510_s17, 3 }
   0xe   : > { %s1960_s22 = scalar_select %p1586_p4, 1, 0 }
   0xf   : > { %s1961_s23 = scalar_select %p1591_p6, 1, 0 }
  0x10   : > { %p1596_p8 = pnand %p1100_p5, %p165_p7  ;;  %s1512_s25 = smov [#allocation5]  }
  0x11   : > { %s183_s26 = sshll.u32 %s1512_s25, 4  ;;  %s46_s28 = sadd.s32 1, %s1506_s16  ;;  %s184_s26 = int_to_ptr.vmem [resolvable:$true] %s183_s26 }
  0x12   : > { %s1962_s24 = scalar_select %p1596_p8, 1, 0 }
  0x13   : > { %p1158_p9 = pneg %p1596_p8  ;;  %s1366_s4 = scalar_lea.hbm %s1951_s1, 2048 }
  0x14   : > { %p1367_p12 = scmp.ne.s32.totalorder %s1951_s1, %s1366_s4  ;;  %p1373_p5 = scmp.lt.u32.totalorder %s1366_s4, %s1951_s1 }
  0x15   : > { %p1605_p11 = pnand %p1158_p9, %p1576_p1 }
  0x17   : > { %p1368_p13 = pneg %p1605_p11 }
  0x19   : > { %p1369_p0 = pnand %p1368_p13, %p1367_p12 }
  0x1b   : > { %p1370_p3 = pneg %p1369_p0 }
  0x1d   : > { %p1375_p7 = pnand %p1373_p5, %p1370_p3 }
  0x1f   : > { %1378 = shalt.err (!%p1375_p7)
}
  0x20   : > { %s1379_s9 = scalar_lea.vmem %s184_s26, 2048  ;;  %p1387_p1 = scmp.lt.s32.totalorder %s184_s26, %s184_s26 }
  0x21   : > { %p1380_p9 = scmp.ne.s32.totalorder %s184_s26, %s1379_s9  ;;  %p1388_p4 = scmp.lt.s32.totalorder %s1379_s9, %s1379_s9 }
  0x23   : > { %p1382_p10 = pnand %p1380_p9, %p1368_p13  ;;  %p1389_p8 = por %p1388_p4, %p1387_p1 }
  0x25   : > { %p1383_p6 = pneg %p1382_p10 }
  0x27   : > { %p1390_p2 = pnand %p1389_p8, %p1383_p6 }
  0x29   : > { %1393 = shalt.err (!%p1390_p2)
}
  0x2a   : > { %s1513_s10 = smov 128   ;;  %s1514_s11 = smov 8  }
  0x2b   : > { %1161 = dma.hbm_to_vmem [thread:$0]  (!%p1605_p11), %s1951_s1, 2048, %s184_s26, [#allocation6], %s1513_s10, %s1513_s10, %s1514_s11  }
  0x2c   : > { %p48_p1 = scmp.ge.s32.totalorder %s46_s28, 2  ;;  %s57_s25 = sadd.s32 1, %s1498_s14 }
  0x2d   : > { %p64_p2 = scmp.ne.s32.totalorder %s1498_s14, %s1494_s13  ;;  %p65_p4 = scmp.eq.s32.totalorder %s1510_s17, 0 }
  0x2e   : > { %s1979_s28 = smov (%p48_p1, %s46_s28), 0  ;;  %p1965_p8 = scmp.ne.s32.totalorder %s1959_s21, 0 }
  0x2f   : > { %p1632_p6 = por %p65_p4, %p64_p2  ;;  %s50_s27 = ssub.s32 %s1506_s16, %s1979_s28 }
  0x30   : > { %p1638_p10 = por %p1965_p8, %p64_p2  ;;  %p1171_p12 = scmp.lt.s32.totalorder %s1510_s17, 2 }
  0x31   : > { %p55_p11 = scmp.eq.s32.totalorder %s50_s27, 0  ;;  %s205_s26 = sand.u32 1, %s1498_s14  }
  0x32   : > { %s1104_s4 = sshll.u32 %s205_s26, 8  ;;  %s1132_s6 = sshll.u32 %s1506_s16, 12 }
  0x33   : > { %s1647_s5 = scalar_select %p55_p11, %s1498_s14, %s57_s25  }
  0x34   : > { %s1653_s9 = scalar_lea.hbm %s1950_s0, %s1132_s6  ;;  %s209_s21 = scalar_lea.vmem [#allocation2], %s1104_s4 }
  0x35   : > { %s221_s10 = sshll.u32 %s209_s21, 4  ;;  %p1659_p13 = pnand %p1171_p12, %p1632_p6  ;;  %s1655_s10 = int_to_ptr.vmem [resolvable:$true] %s221_s10 }
  0x36   : > { %s1663_s18 = scalar_lea.sflag [#allocation3], %s205_s26  ;;  %s1394_s19 = scalar_lea.hbm %s1653_s9, 4096 }
  0x37   : > { %p1395_p0 = scmp.ne.s32.totalorder %s1653_s9, %s1394_s19  ;;  %p1396_p3 = pneg %p1659_p13 }
  0x38   : > { %s1399_s29 = scalar_lea.hbm %s1950_s0, 8192  ;;  %p1400_p9 = scmp.lt.u32.totalorder %s1653_s9, %s1950_s0 }
  0x39   : > { %p1397_p5 = pnand %p1396_p3, %p1395_p0  ;;  %p1401_p1 = scmp.lt.u32.totalorder %s1399_s29, %s1394_s19 }
  0x3a   : > { %p1403_p4 = scmp.lt.u32.totalorder %s1394_s19, %s1653_s9 }
  0x3b   : > { %p1398_p7 = pneg %p1397_p5  ;;  %p1402_p2 = por %p1401_p1, %p1400_p9 }
  0x3d   : > { %p1404_p6 = por %p1403_p4, %p1402_p2 }
  0x3f   : > { %p1405_p8 = pnand %p1404_p6, %p1398_p7 }
  0x41   : > { %1408 = shalt.err (!%p1405_p8)
}
  0x42   : > { %s1409_s26 = scalar_lea.vmem %s1655_s10, 4096  ;;  %s1515_s7 = smov [#allocation2]  }
  0x43   : > { %p1410_p12 = scmp.ne.s32.totalorder %s1655_s10, %s1409_s26  ;;  %s1414_s8 = sshll.u32 %s1515_s7, 4  ;;  %s1415_s8 = int_to_ptr.vmem [resolvable:$false] %s1414_s8 }
  0x44   : > { %s1416_s21 = scalar_lea.vmem %s1415_s8, 8192  ;;  %p1417_p5 = scmp.lt.s32.totalorder %s1655_s10, %s1415_s8 }
  0x45   : > { %p1412_p11 = pnand %p1410_p12, %p1396_p3  ;;  %p1418_p9 = scmp.lt.s32.totalorder %s1416_s21, %s1409_s26 }
  0x47   : > { %p1413_p0 = pneg %p1412_p11  ;;  %p1419_p1 = por %p1418_p9, %p1417_p5 }
  0x49   : > { %p1420_p2 = pnand %p1419_p1, %p1413_p0 }
  0x4b   : > { %1423 = shalt.err (!%p1420_p2)
}
  0x4c   : > { %s1516_s19 = smov 256   ;;  %s1517_s25 = smov 16  }
  0x4d   : > { %1165 = dma.hbm_to_vmem [thread:$0]  (!%p1659_p13), %s1653_s9, 4096, %s1655_s10, %s1663_s18, %s1516_s19, %s1516_s19, %s1517_s25  }
  0x4e   : > { %p1968_p3 = scmp.ne.s32.totalorder %s1962_s24, 0 }
  0x4f   : > { %s1694_s27 = sand.u32 (!%p1968_p3), 1, %s1494_s13   ;;  %p1969_p7 = scmp.ne.s32.totalorder (!%p1968_p3), %s1960_s22, 0 }
  0x50   : > { %233 = sbr.rel (%p1968_p3) target bundleno = 519 (0x207), region = 32  ;;  %s1108_s29 = sshll.u32 (!%p1968_p3), %s1694_s27, 8 }
  0x51   : > { %s236_s4 = scalar_lea.sflag (!%p1968_p3), [#allocation3], %s1694_s27  ;;  %s1698_s6 = scalar_lea.vmem (!%p1968_p3), [#allocation2], %s1108_s29 }
  0x57   : > { %1477 = dma.done.wait (%p1969_p7), %s236_s4, 4096  }
  0x58   : > { %1479 = vsyncadd (%p1969_p7), %s236_s4, 4294963200  ;;  %p1970_p13 = scmp.ne.s32.totalorder %s1958_s20, 0 }
  0x5a   : > { %1481 = dma.done.wait (%p1970_p13), [#allocation6], 2048  }
  0x5b   : > { %1483 = vsyncadd (%p1970_p13), [#allocation6], 4294965248  ;;  %v362_v0 = vld [vmem:[%s1698_s6] sm:$0xff]  ;;  %v363_v1 = vld [vmem:[%s1698_s6 + $0x8] sm:$0xff]  ;;  %v1518_v11 = vmov 0   ;;  %s1110_s24 = sshll.u32 %s1694_s27, 9 }
  0x5c   : > { %v364_v2 = vld [vmem:[%s1698_s6 + $0x10] sm:$0xff]  ;;  %v1230_v3 = vpack.i.bf16 %v363_v1, %v362_v0  ;;  %v365_v4 = vld [vmem:[%s1698_s6 + $0x18] sm:$0xff]  ;;  %v366_v6 = vld [vmem:[%s1698_s6 + $0x20] sm:$0xff]  ;;  %666 = vmatprep.mubr.bf16.mxu0 %v1518_v11  ;;  %746 = vmatprep.mubr.bf16.mxu1 %v1518_v11  ;;  %s1768_s9 = scalar_lea.vmem [#allocation7], %s1110_s24  ;;  %s1133_s10 = sshll.u32 %s1502_s15, 13 }
  0x5d   : > { %v1232_v5 = vpack.i.bf16 %v365_v4, %v364_v2  ;;  %v367_v7 = vld [vmem:[%s1698_s6 + $0x28] sm:$0xff]  ;;  %v368_v9 = vld [vmem:[%s1698_s6 + $0x30] sm:$0xff]  ;;  %v369_v10 = vld [vmem:[%s1698_s6 + $0x38] sm:$0xff]  ;;  %s974_s11 = sshll.u32 %s1768_s9, 4  ;;  %s1891_s26 = scalar_lea.hbm %s1953_s3, %s1133_s10  ;;  %s1893_s11 = int_to_ptr.vmem [resolvable:$true] %s974_s11 }
  0x5e   : > { %1231 = vxpose.xlu0.b32.start [1/16] %v1230_v3, 128  ;;  %v1234_v8 = vpack.i.bf16 %v367_v7, %v366_v6  ;;  %v370_v12 = vld [vmem:[%s1698_s6 + $0x40] sm:$0xff]  ;;  %v371_v13 = vld [vmem:[%s1698_s6 + $0x48] sm:$0xff]  ;;  %v1236_v14 = vpack.i.bf16 %v369_v10, %v368_v9  ;;  %v1345_v17 = vld [vmem:[#allocation5 + $0x14] ss:$8 sps:$4 sm:$0xff]   ;;  %s956_s7 = scalar_lea.sflag [#allocation4], %s1694_s27  ;;  %s1424_s8 = scalar_lea.vmem %s1893_s11, 8192 }
  0x5f   : > { %v1342_v15 = vld [vmem:[#allocation5 + $0x4] ss:$8 sps:$4 sm:$0xff]   ;;  %v1344_v16 = vld [vmem:[#allocation5] ss:$8 sps:$4 sm:$0xff]   ;;  %v1347_v18 = vld [vmem:[#allocation5 + $0x10] ss:$8 sps:$4 sm:$0xff]   ;;  %v1238_v19 = vpack.i.bf16 %v371_v13, %v370_v12  ;;  %p1425_p4 = scmp.ne.s32.totalorder %s1893_s11, %s1424_s8 }
  0x60   : > { %634 = vmatprep.subr.bf16.mxu0 %v1342_v15  ;;  %1134 = vmatprep.subr.bf16.mxu1 %v1342_v15  ;;  %v372_v20 = vld [vmem:[%s1698_s6 + $0x50] sm:$0xff]  ;;  %v1348_v21 = vld [vmem:[#allocation5 + $0x24] ss:$8 sps:$4 sm:$0xff]   ;;  %v373_v22 = vld [vmem:[%s1698_s6 + $0x58] sm:$0xff]  ;;  %s1519_s21 = smov [#allocation7]  }
  0x61   : > { %635 = vmatpush1.bf16.msra.mxu0 %v1344_v16  ;;  %1142 = vmatpush1.bf16.msra.mxu1 %v1344_v16  ;;  %v1350_v23 = vld [vmem:[#allocation5 + $0x20] ss:$8 sps:$4 sm:$0xff]   ;;  %v1240_v24 = vpack.i.bf16 %v373_v22, %v372_v20  ;;  %v1351_v26 = vld [vmem:[#allocation5 + $0x34] ss:$8 sps:$4 sm:$0xff]   ;;  %v1353_v28 = vld [vmem:[#allocation5 + $0x30] ss:$8 sps:$4 sm:$0xff]   ;;  %p1426_p6 = pnand %p1425_p4, %p1638_p10 }
  0x62   : > { %1233 = vxpose.xlu0.b32.cont [2/16] %v1232_v5, 128  ;;  %636 = vmatprep.subr.bf16.mxu0 %v1345_v17  ;;  %v374_v25 = vld [vmem:[%s1698_s6 + $0x60] sm:$0xff]  ;;  %v375_v27 = vld [vmem:[%s1698_s6 + $0x68] sm:$0xff]  ;;  %v376_v31 = vld [vmem:[%s1698_s6 + $0x70] sm:$0xff]  ;;  %s1428_s19 = sshll.u32 %s1519_s21, 4  ;;  %s1429_s19 = int_to_ptr.vmem [resolvable:$false] %s1428_s19 }
  0x63   : > { %1135 = vmatprep.subr.bf16.mxu1 %v1345_v17  ;;  %v1242_v29 = vpack.i.bf16 %v375_v27, %v374_v25  ;;  %v1354_v30 = vld [vmem:[#allocation5 + $0x44] ss:$8 sps:$4 sm:$0xff]   ;;  %v377_v32 = vld [vmem:[%s1698_s6 + $0x78] sm:$0xff]  ;;  %v1356_v33 = vld [vmem:[#allocation5 + $0x40] ss:$8 sps:$4 sm:$0xff]   ;;  %p1427_p8 = pneg %p1426_p6  ;;  %s1430_s25 = scalar_lea.vmem %s1429_s19, 16384 }
  0x64   : > { %v1244_v34 = vpack.i.bf16 %v377_v32, %v376_v31  ;;  %v1357_v35 = vld [vmem:[#allocation5 + $0x54] ss:$8 sps:$4 sm:$0xff]   ;;  %v378_v36 = vld [vmem:[%s1698_s6 + $0x80] sm:$0xff]  ;;  %v379_v37 = vld [vmem:[%s1698_s6 + $0x88] sm:$0xff]  ;;  %p1431_p12 = scmp.lt.s32.totalorder %s1893_s11, %s1429_s19  ;;  %p1432_p11 = scmp.lt.s32.totalorder %s1430_s25, %s1424_s8 }
  0x65   : > { %637 = vmatpush1.bf16.msra.mxu0 %v1347_v18  ;;  %1143 = vmatpush1.bf16.msra.mxu1 %v1347_v18  ;;  %v1359_v38 = vld [vmem:[#allocation5 + $0x50] ss:$8 sps:$4 sm:$0xff]   ;;  %v1246_v39 = vpack.i.bf16 %v379_v37, %v378_v36  ;;  %v1360_v40 = vld [vmem:[#allocation5 + $0x64] ss:$8 sps:$4 sm:$0xff]   ;;  %v1362_v43 = vld [vmem:[#allocation5 + $0x60] ss:$8 sps:$4 sm:$0xff]  }
  0x66   : > { %1235 = vxpose.xlu0.b32.cont [3/16] %v1234_v8, 128  ;;  %638 = vmatprep.subr.bf16.mxu0 %v1348_v21  ;;  %v380_v41 = vld [vmem:[%s1698_s6 + $0x90] sm:$0xff]  ;;  %v381_v42 = vld [vmem:[%s1698_s6 + $0x98] sm:$0xff]  ;;  %v382_v46 = vld [vmem:[%s1698_s6 + $0xa0] sm:$0xff]  ;;  %p1433_p0 = por %p1432_p11, %p1431_p12 }
  0x67   : > { %1136 = vmatprep.subr.bf16.mxu1 %v1348_v21  ;;  %v1248_v44 = vpack.i.bf16 %v381_v42, %v380_v41  ;;  %v1363_v45 = vld [vmem:[#allocation5 + $0x74] ss:$8 sps:$4 sm:$0xff]   ;;  %v383_v47 = vld [vmem:[%s1698_s6 + $0xa8] sm:$0xff]  ;;  %v1365_v48 = vld [vmem:[#allocation5 + $0x70] ss:$8 sps:$4 sm:$0xff]  }
  0x68   : > { %v1250_v49 = vpack.i.bf16 %v383_v47, %v382_v46  ;;  %v384_v50 = vld [vmem:[%s1698_s6 + $0xb0] sm:$0xff]  ;;  %v385_v51 = vld [vmem:[%s1698_s6 + $0xb8] sm:$0xff]  ;;  %v386_v53 = vld [vmem:[%s1698_s6 + $0xc0] sm:$0xff]  ;;  %p1434_p5 = pnand %p1433_p0, %p1427_p8 }
  0x69   : > { %639 = vmatpush1.bf16.msra.mxu0 %v1350_v23  ;;  %1144 = vmatpush1.bf16.msra.mxu1 %v1350_v23  ;;  %v1252_v52 = vpack.i.bf16 %v385_v51, %v384_v50  ;;  %v387_v54 = vld [vmem:[%s1698_s6 + $0xc8] sm:$0xff]  ;;  %v388_v56 = vld [vmem:[%s1698_s6 + $0xd0] sm:$0xff]  ;;  %v389_v57 = vld [vmem:[%s1698_s6 + $0xd8] sm:$0xff] }
  0x6a   : > { %1237 = vxpose.xlu0.b32.cont [4/16] %v1236_v14, 128  ;;  %640 = vmatprep.subr.bf16.mxu0 %v1351_v26  ;;  %v1254_v55 = vpack.i.bf16 %v387_v54, %v386_v53  ;;  %v1256_v58 = vpack.i.bf16 %v389_v57, %v388_v56  ;;  %v390_v59 = vld [vmem:[%s1698_s6 + $0xe0] sm:$0xff]  ;;  %v391_v60 = vld [vmem:[%s1698_s6 + $0xe8] sm:$0xff]  ;;  %v392_v62 = vld [vmem:[%s1698_s6 + $0xf0] sm:$0xff] }
  0x6b   : > { %1137 = vmatprep.subr.bf16.mxu1 %v1351_v26  ;;  %v1258_v61 = vpack.i.bf16 %v391_v60, %v390_v59  ;;  %v393_v63 = vld [vmem:[%s1698_s6 + $0xf8] sm:$0xff] }
  0x6c   : > { %v1260_v0 = vpack.i.bf16 %v393_v63, %v392_v62 }
  0x6d   : > { %641 = vmatpush1.bf16.msra.mxu0 %v1353_v28  ;;  %1145 = vmatpush1.bf16.msra.mxu1 %v1353_v28 }
  0x6e   : > { %1239 = vxpose.xlu0.b32.cont [5/16] %v1238_v19, 128  ;;  %642 = vmatprep.subr.bf16.mxu0 %v1354_v30 }
  0x6f   : > { %1138 = vmatprep.subr.bf16.mxu1 %v1354_v30 }
  0x71   : > { %643 = vmatpush1.bf16.msra.mxu0 %v1356_v33  ;;  %1146 = vmatpush1.bf16.msra.mxu1 %v1356_v33 }
  0x72   : > { %1241 = vxpose.xlu0.b32.cont [6/16] %v1240_v24, 128  ;;  %644 = vmatprep.subr.bf16.mxu0 %v1357_v35 }
  0x73   : > { %1139 = vmatprep.subr.bf16.mxu1 %v1357_v35 }
  0x75   : > { %645 = vmatpush1.bf16.msra.mxu0 %v1359_v38  ;;  %1147 = vmatpush1.bf16.msra.mxu1 %v1359_v38 }
  0x76   : > { %1243 = vxpose.xlu0.b32.cont [7/16] %v1242_v29, 128  ;;  %646 = vmatprep.subr.bf16.mxu0 %v1360_v40 }
  0x77   : > { %1140 = vmatprep.subr.bf16.mxu1 %v1360_v40 }
  0x79   : > { %647 = vmatpush1.bf16.msra.mxu0 %v1362_v43  ;;  %1148 = vmatpush1.bf16.msra.mxu1 %v1362_v43 }
  0x7a   : > { %1245 = vxpose.xlu0.b32.cont [8/16] %v1244_v34, 128  ;;  %648 = vmatprep.subr.bf16.mxu0 %v1363_v45 }
  0x7b   : > { %1141 = vmatprep.subr.bf16.mxu1 %v1363_v45 }
  0x7d   : > { %649 = vmatpush1.bf16.msra.mxu0 %v1365_v48  ;;  %1149 = vmatpush1.bf16.msra.mxu1 %v1365_v48 }
  0x7e   : > { %1247 = vxpose.xlu0.b32.cont [9/16] %v1246_v39, 128 }
  0x82   : > { %1249 = vxpose.xlu0.b32.cont [10/16] %v1248_v44, 128 }
  0x86   : > { %1251 = vxpose.xlu0.b32.cont [11/16] %v1250_v49, 128 }
  0x8a   : > { %1253 = vxpose.xlu0.b32.cont [12/16] %v1252_v52, 128 }
  0x8e   : > { %1255 = vxpose.xlu0.b32.cont [13/16] %v1254_v55, 128 }
  0x92   : > { %1257 = vxpose.xlu0.b32.cont [14/16] %v1256_v58, 128 }
  0x96   : > { %1259 = vxpose.xlu0.b32.cont [15/16] %v1258_v61, 128 }
  0x9a   : > { %1261 = vxpose.xlu0.b32.end [16/16] %v1260_v0, 128 }
  0xde   : > { %v1262_v1 = vpop.trf.xlu0 }
  0xdf   : > { %v1266_v2 = vunpack.i.h.bf16 %v1262_v1  ;;  %v1263_v3 = vunpack.i.l.bf16 %v1262_v1 }
  0xe2   : > { %v1267_v4 = vpop.trf.xlu0 }
  0xe3   : > { %v1271_v5 = vunpack.i.h.bf16 %v1267_v4  ;;  %v1268_v6 = vunpack.i.l.bf16 %v1267_v4 }
  0xe5   : > { %v458_v7 = vpack.c.bf16 %v1268_v6, %v1263_v3  ;;  %v466_v8 = vpack.c.bf16 %v1271_v5, %v1266_v2  ;;  %v288_v2 = vlaneseq  ;;  %v286_v5 = vld [vmem:[%s1952_s2] sm:$0x3] }
  0xe6   : > { %v1272_v9 = vpop.trf.xlu0 }
  0xe7   : > { %667 = vmatmul.mubr.bf16.vlgmr.msra.gmra.mrb[0].mxu0 %v458_v7  ;;  %747 = vmatmul.mubr.bf16.vlgmr.msra.gmra.mrb[0].mxu1 %v466_v8  ;;  %v1276_v10 = vunpack.i.h.bf16 %v1272_v9  ;;  %v1273_v12 = vunpack.i.l.bf16 %v1272_v9  ;;  %v289_v3 = vshrl.u32 %v288_v2, 7 }
  0xe8   : > { %676 = vmatprep.mubr.bf16.mxu0 %v1518_v11  ;;  %756 = vmatprep.mubr.bf16.mxu1 %v1518_v11 }
  0xe9   : > { %v290_v4 = vsub.s32 0, %v289_v3  ;;  %v294_v6 = vsub.s32 1, %v289_v3 }
  0xea   : > { %v1277_v13 = vpop.trf.xlu0 }
  0xeb   : > { %v1281_v14 = vunpack.i.h.bf16 %v1277_v13  ;;  %v1278_v15 = vunpack.i.l.bf16 %v1277_v13  ;;  %v1760_v7 = vrot.slane %v286_v5, %v290_v4 }
  0xed   : > { %v459_v16 = vpack.c.bf16 %v1278_v15, %v1273_v12  ;;  %v467_v17 = vpack.c.bf16 %v1281_v14, %v1276_v10 }
  0xee   : > { %v1282_v18 = vpop.trf.xlu0 }
  0xef   : > { %677 = vmatmul.mubr.bf16.gmra.mrb[4].mxu0 %v459_v16  ;;  %757 = vmatmul.mubr.bf16.gmra.mrb[4].mxu1 %v467_v17  ;;  %v1286_v19 = vunpack.i.h.bf16 %v1282_v18  ;;  %v1283_v20 = vunpack.i.l.bf16 %v1282_v18 }
  0xf0   : > { %686 = vmatprep.mubr.bf16.mxu0 %v1518_v11  ;;  %766 = vmatprep.mubr.bf16.mxu1 %v1518_v11 }
  0xf2   : > { %v1287_v21 = vpop.trf.xlu0 }
  0xf3   : > { %v1291_v22 = vunpack.i.h.bf16 %v1287_v21  ;;  %v1288_v23 = vunpack.i.l.bf16 %v1287_v21 }
  0xf5   : > { %v460_v24 = vpack.c.bf16 %v1288_v23, %v1283_v20  ;;  %v468_v25 = vpack.c.bf16 %v1291_v22, %v1286_v19 }
  0xf6   : > { %v1292_v26 = vpop.trf.xlu0 }
  0xf7   : > { %687 = vmatmul.mubr.bf16.gmra.mrb[8].mxu0 %v460_v24  ;;  %767 = vmatmul.mubr.bf16.gmra.mrb[8].mxu1 %v468_v25  ;;  %v1296_v27 = vunpack.i.h.bf16 %v1292_v26  ;;  %v1293_v28 = vunpack.i.l.bf16 %v1292_v26 }
  0xf8   : > { %696 = vmatprep.mubr.bf16.mxu0 %v1518_v11  ;;  %776 = vmatprep.mubr.bf16.mxu1 %v1518_v11 }
  0xfa   : > { %v1297_v29 = vpop.trf.xlu0 }
  0xfb   : > { %v1301_v30 = vunpack.i.h.bf16 %v1297_v29  ;;  %v1298_v31 = vunpack.i.l.bf16 %v1297_v29 }
  0xfd   : > { %v461_v32 = vpack.c.bf16 %v1298_v31, %v1293_v28  ;;  %v469_v33 = vpack.c.bf16 %v1301_v30, %v1296_v27 }
  0xfe   : > { %v1302_v34 = vpop.trf.xlu0 }
  0xff   : > { %697 = vmatmul.mubr.bf16.gmra.mrb[12].mxu0 %v461_v32  ;;  %777 = vmatmul.mubr.bf16.gmra.mrb[12].mxu1 %v469_v33  ;;  %v1306_v35 = vunpack.i.h.bf16 %v1302_v34  ;;  %v1303_v36 = vunpack.i.l.bf16 %v1302_v34 }
 0x100   : > { %706 = vmatprep.mubr.bf16.mxu0 %v1518_v11  ;;  %786 = vmatprep.mubr.bf16.mxu1 %v1518_v11 }
 0x102   : > { %v1307_v37 = vpop.trf.xlu0 }
 0x103   : > { %v1311_v38 = vunpack.i.h.bf16 %v1307_v37  ;;  %v1308_v39 = vunpack.i.l.bf16 %v1307_v37 }
 0x105   : > { %v462_v40 = vpack.c.bf16 %v1308_v39, %v1303_v36  ;;  %v470_v41 = vpack.c.bf16 %v1311_v38, %v1306_v35 }
 0x106   : > { %v1312_v42 = vpop.trf.xlu0 }
 0x107   : > { %707 = vmatmul.mubr.bf16.gmra.mrb[16].mxu0 %v462_v40  ;;  %787 = vmatmul.mubr.bf16.gmra.mrb[16].mxu1 %v470_v41  ;;  %v1316_v43 = vunpack.i.h.bf16 %v1312_v42  ;;  %v1313_v44 = vunpack.i.l.bf16 %v1312_v42 }
 0x108   : > { %716 = vmatprep.mubr.bf16.mxu0 %v1518_v11  ;;  %796 = vmatprep.mubr.bf16.mxu1 %v1518_v11 }
 0x10a   : > { %v1317_v45 = vpop.trf.xlu0 }
 0x10b   : > { %v1321_v46 = vunpack.i.h.bf16 %v1317_v45  ;;  %v1318_v47 = vunpack.i.l.bf16 %v1317_v45 }
 0x10d   : > { %v463_v48 = vpack.c.bf16 %v1318_v47, %v1313_v44  ;;  %v471_v49 = vpack.c.bf16 %v1321_v46, %v1316_v43 }
 0x10e   : > { %v1322_v50 = vpop.trf.xlu0 }
 0x10f   : > { %717 = vmatmul.mubr.bf16.gmra.mrb[20].mxu0 %v463_v48  ;;  %797 = vmatmul.mubr.bf16.gmra.mrb[20].mxu1 %v471_v49  ;;  %v1326_v51 = vunpack.i.h.bf16 %v1322_v50  ;;  %v1323_v52 = vunpack.i.l.bf16 %v1322_v50 }
 0x110   : > { %726 = vmatprep.mubr.bf16.mxu0 %v1518_v11  ;;  %806 = vmatprep.mubr.bf16.mxu1 %v1518_v11 }
 0x112   : > { %v1327_v53 = vpop.trf.xlu0 }
 0x113   : > { %v1331_v54 = vunpack.i.h.bf16 %v1327_v53  ;;  %v1328_v55 = vunpack.i.l.bf16 %v1327_v53 }
 0x115   : > { %v464_v56 = vpack.c.bf16 %v1328_v55, %v1323_v52  ;;  %v472_v57 = vpack.c.bf16 %v1331_v54, %v1326_v51 }
 0x116   : > { %v1332_v58 = vpop.trf.xlu0 }
 0x117   : > { %727 = vmatmul.mubr.bf16.gmra.mrb[24].mxu0 %v464_v56  ;;  %807 = vmatmul.mubr.bf16.gmra.mrb[24].mxu1 %v472_v57  ;;  %v1336_v59 = vunpack.i.h.bf16 %v1332_v58  ;;  %v1333_v60 = vunpack.i.l.bf16 %v1332_v58 }
 0x118   : > { %736 = vmatprep.mubr.bf16.mxu0 %v1518_v11  ;;  %816 = vmatprep.mubr.bf16.mxu1 %v1518_v11  ;;  %v1762_v11 = vrot.slane %v286_v5, %v294_v6 }
 0x11a   : > { %v1337_v61 = vpop.trf.xlu0 }
 0x11b   : > { %v1341_v62 = vunpack.i.h.bf16 %v1337_v61  ;;  %v1338_v63 = vunpack.i.l.bf16 %v1337_v61 }
 0x11d   : > { %v465_v0 = vpack.c.bf16 %v1338_v63, %v1333_v60  ;;  %v473_v1 = vpack.c.bf16 %v1341_v62, %v1336_v59 }
 0x11f   : > { %737 = vmatmul.mubr.bf16.gmra.mrb[28].mxu0 %v465_v0  ;;  %817 = vmatmul.mubr.bf16.gmra.mrb[28].mxu1 %v473_v1 }
 0x1ba   : > { %v668_v8 = vpop.f32.mrb[0].mxu0  ;;  %v748_v9 = vpop.f32.mrb[0].mxu1 }
 0x1bb   : > { %v827_v10 = vadd.f32 %v668_v8, %v1760_v7  ;;  %v859_v12 = vadd.f32 %v748_v9, %v1760_v7  ;;  %v670_v13 = vpop.f32.mrb[1].mxu0  ;;  %v750_v14 = vpop.f32.mrb[1].mxu1 }
 0x1bc   : > { %v828_v15 = vadd.f32 %v670_v13, %v1762_v11  ;;  %v860_v16 = vadd.f32 %v750_v14, %v1762_v11  ;;  %v672_v17 = vpop.f32.mrb[2].mxu0  ;;  %v752_v18 = vpop.f32.mrb[2].mxu1 }
 0x1bd   : > { %891 = vst [vmem:[%s1768_s9] sm:$0xff] %v827_v10  ;;  %923 = vst [vmem:[%s1768_s9 + $0x100] sm:$0xff] %v859_v12  ;;  %v829_v19 = vadd.f32 %v672_v17, %v1760_v7  ;;  %v861_v20 = vadd.f32 %v752_v18, %v1760_v7  ;;  %v674_v21 = vpop.f32.mrb[3].mxu0  ;;  %v754_v22 = vpop.f32.mrb[3].mxu1 }
 0x1be   : > { %892 = vst [vmem:[%s1768_s9 + $0x8] sm:$0xff] %v828_v15  ;;  %924 = vst [vmem:[%s1768_s9 + $0x108] sm:$0xff] %v860_v16  ;;  %v830_v23 = vadd.f32 %v674_v21, %v1762_v11  ;;  %v862_v24 = vadd.f32 %v754_v22, %v1762_v11 }
 0x1bf   : > { %893 = vst [vmem:[%s1768_s9 + $0x10] sm:$0xff] %v829_v19  ;;  %925 = vst [vmem:[%s1768_s9 + $0x110] sm:$0xff] %v861_v20 }
 0x1c0   : > { %894 = vst [vmem:[%s1768_s9 + $0x18] sm:$0xff] %v830_v23  ;;  %926 = vst [vmem:[%s1768_s9 + $0x118] sm:$0xff] %v862_v24 }
 0x1c2   : > { %v678_v25 = vpop.f32.mrb[4].mxu0  ;;  %v758_v26 = vpop.f32.mrb[4].mxu1 }
 0x1c3   : > { %v831_v27 = vadd.f32 %v678_v25, %v1760_v7  ;;  %v863_v28 = vadd.f32 %v758_v26, %v1760_v7  ;;  %v680_v29 = vpop.f32.mrb[5].mxu0  ;;  %v760_v30 = vpop.f32.mrb[5].mxu1 }
 0x1c4   : > { %v832_v31 = vadd.f32 %v680_v29, %v1762_v11  ;;  %v864_v32 = vadd.f32 %v760_v30, %v1762_v11  ;;  %v682_v33 = vpop.f32.mrb[6].mxu0  ;;  %v762_v34 = vpop.f32.mrb[6].mxu1 }
 0x1c5   : > { %895 = vst [vmem:[%s1768_s9 + $0x20] sm:$0xff] %v831_v27  ;;  %927 = vst [vmem:[%s1768_s9 + $0x120] sm:$0xff] %v863_v28  ;;  %v833_v35 = vadd.f32 %v682_v33, %v1760_v7  ;;  %v865_v36 = vadd.f32 %v762_v34, %v1760_v7  ;;  %v684_v37 = vpop.f32.mrb[7].mxu0  ;;  %v764_v38 = vpop.f32.mrb[7].mxu1 }
 0x1c6   : > { %896 = vst [vmem:[%s1768_s9 + $0x28] sm:$0xff] %v832_v31  ;;  %928 = vst [vmem:[%s1768_s9 + $0x128] sm:$0xff] %v864_v32  ;;  %v834_v39 = vadd.f32 %v684_v37, %v1762_v11  ;;  %v866_v40 = vadd.f32 %v764_v38, %v1762_v11 }
 0x1c7   : > { %897 = vst [vmem:[%s1768_s9 + $0x30] sm:$0xff] %v833_v35  ;;  %929 = vst [vmem:[%s1768_s9 + $0x130] sm:$0xff] %v865_v36 }
 0x1c8   : > { %898 = vst [vmem:[%s1768_s9 + $0x38] sm:$0xff] %v834_v39  ;;  %930 = vst [vmem:[%s1768_s9 + $0x138] sm:$0xff] %v866_v40 }
 0x1ca   : > { %v688_v41 = vpop.f32.mrb[8].mxu0  ;;  %v768_v42 = vpop.f32.mrb[8].mxu1 }
 0x1cb   : > { %v835_v43 = vadd.f32 %v688_v41, %v1760_v7  ;;  %v867_v44 = vadd.f32 %v768_v42, %v1760_v7  ;;  %v690_v45 = vpop.f32.mrb[9].mxu0  ;;  %v770_v46 = vpop.f32.mrb[9].mxu1 }
 0x1cc   : > { %v836_v47 = vadd.f32 %v690_v45, %v1762_v11  ;;  %v868_v48 = vadd.f32 %v770_v46, %v1762_v11  ;;  %v692_v49 = vpop.f32.mrb[10].mxu0  ;;  %v772_v50 = vpop.f32.mrb[10].mxu1 }
 0x1cd   : > { %899 = vst [vmem:[%s1768_s9 + $0x40] sm:$0xff] %v835_v43  ;;  %931 = vst [vmem:[%s1768_s9 + $0x140] sm:$0xff] %v867_v44  ;;  %v837_v51 = vadd.f32 %v692_v49, %v1760_v7  ;;  %v869_v52 = vadd.f32 %v772_v50, %v1760_v7  ;;  %v694_v53 = vpop.f32.mrb[11].mxu0  ;;  %v774_v54 = vpop.f32.mrb[11].mxu1 }
 0x1ce   : > { %900 = vst [vmem:[%s1768_s9 + $0x48] sm:$0xff] %v836_v47  ;;  %932 = vst [vmem:[%s1768_s9 + $0x148] sm:$0xff] %v868_v48  ;;  %v838_v55 = vadd.f32 %v694_v53, %v1762_v11  ;;  %v870_v56 = vadd.f32 %v774_v54, %v1762_v11 }
 0x1cf   : > { %901 = vst [vmem:[%s1768_s9 + $0x50] sm:$0xff] %v837_v51  ;;  %933 = vst [vmem:[%s1768_s9 + $0x150] sm:$0xff] %v869_v52 }
 0x1d0   : > { %902 = vst [vmem:[%s1768_s9 + $0x58] sm:$0xff] %v838_v55  ;;  %934 = vst [vmem:[%s1768_s9 + $0x158] sm:$0xff] %v870_v56 }
 0x1d2   : > { %v698_v57 = vpop.f32.mrb[12].mxu0  ;;  %v778_v58 = vpop.f32.mrb[12].mxu1 }
 0x1d3   : > { %v839_v59 = vadd.f32 %v698_v57, %v1760_v7  ;;  %v871_v60 = vadd.f32 %v778_v58, %v1760_v7  ;;  %v700_v61 = vpop.f32.mrb[13].mxu0  ;;  %v780_v62 = vpop.f32.mrb[13].mxu1 }
 0x1d4   : > { %v840_v63 = vadd.f32 %v700_v61, %v1762_v11  ;;  %v872_v0 = vadd.f32 %v780_v62, %v1762_v11  ;;  %v702_v1 = vpop.f32.mrb[14].mxu0  ;;  %v782_v2 = vpop.f32.mrb[14].mxu1 }
 0x1d5   : > { %903 = vst [vmem:[%s1768_s9 + $0x60] sm:$0xff] %v839_v59  ;;  %935 = vst [vmem:[%s1768_s9 + $0x160] sm:$0xff] %v871_v60  ;;  %v841_v3 = vadd.f32 %v702_v1, %v1760_v7  ;;  %v873_v4 = vadd.f32 %v782_v2, %v1760_v7  ;;  %v704_v5 = vpop.f32.mrb[15].mxu0  ;;  %v784_v6 = vpop.f32.mrb[15].mxu1 }
 0x1d6   : > { %904 = vst [vmem:[%s1768_s9 + $0x68] sm:$0xff] %v840_v63  ;;  %936 = vst [vmem:[%s1768_s9 + $0x168] sm:$0xff] %v872_v0  ;;  %v842_v8 = vadd.f32 %v704_v5, %v1762_v11  ;;  %v874_v9 = vadd.f32 %v784_v6, %v1762_v11 }
 0x1d7   : > { %905 = vst [vmem:[%s1768_s9 + $0x70] sm:$0xff] %v841_v3  ;;  %937 = vst [vmem:[%s1768_s9 + $0x170] sm:$0xff] %v873_v4 }
 0x1d8   : > { %906 = vst [vmem:[%s1768_s9 + $0x78] sm:$0xff] %v842_v8  ;;  %938 = vst [vmem:[%s1768_s9 + $0x178] sm:$0xff] %v874_v9 }
 0x1da   : > { %v708_v10 = vpop.f32.mrb[16].mxu0  ;;  %v788_v12 = vpop.f32.mrb[16].mxu1 }
 0x1db   : > { %v843_v13 = vadd.f32 %v708_v10, %v1760_v7  ;;  %v875_v14 = vadd.f32 %v788_v12, %v1760_v7  ;;  %v710_v15 = vpop.f32.mrb[17].mxu0  ;;  %v790_v16 = vpop.f32.mrb[17].mxu1 }
 0x1dc   : > { %v844_v17 = vadd.f32 %v710_v15, %v1762_v11  ;;  %v876_v18 = vadd.f32 %v790_v16, %v1762_v11  ;;  %v712_v19 = vpop.f32.mrb[18].mxu0  ;;  %v792_v20 = vpop.f32.mrb[18].mxu1 }
 0x1dd   : > { %907 = vst [vmem:[%s1768_s9 + $0x80] sm:$0xff] %v843_v13  ;;  %939 = vst [vmem:[%s1768_s9 + $0x180] sm:$0xff] %v875_v14  ;;  %v845_v21 = vadd.f32 %v712_v19, %v1760_v7  ;;  %v877_v22 = vadd.f32 %v792_v20, %v1760_v7  ;;  %v714_v23 = vpop.f32.mrb[19].mxu0  ;;  %v794_v24 = vpop.f32.mrb[19].mxu1 }
 0x1de   : > { %908 = vst [vmem:[%s1768_s9 + $0x88] sm:$0xff] %v844_v17  ;;  %940 = vst [vmem:[%s1768_s9 + $0x188] sm:$0xff] %v876_v18  ;;  %v846_v25 = vadd.f32 %v714_v23, %v1762_v11  ;;  %v878_v26 = vadd.f32 %v794_v24, %v1762_v11 }
 0x1df   : > { %909 = vst [vmem:[%s1768_s9 + $0x90] sm:$0xff] %v845_v21  ;;  %941 = vst [vmem:[%s1768_s9 + $0x190] sm:$0xff] %v877_v22 }
 0x1e0   : > { %910 = vst [vmem:[%s1768_s9 + $0x98] sm:$0xff] %v846_v25  ;;  %942 = vst [vmem:[%s1768_s9 + $0x198] sm:$0xff] %v878_v26 }
 0x1e2   : > { %v718_v27 = vpop.f32.mrb[20].mxu0  ;;  %v798_v28 = vpop.f32.mrb[20].mxu1 }
 0x1e3   : > { %v847_v29 = vadd.f32 %v718_v27, %v1760_v7  ;;  %v879_v30 = vadd.f32 %v798_v28, %v1760_v7  ;;  %v720_v31 = vpop.f32.mrb[21].mxu0  ;;  %v800_v32 = vpop.f32.mrb[21].mxu1 }
 0x1e4   : > { %v848_v33 = vadd.f32 %v720_v31, %v1762_v11  ;;  %v880_v34 = vadd.f32 %v800_v32, %v1762_v11  ;;  %v722_v35 = vpop.f32.mrb[22].mxu0  ;;  %v802_v36 = vpop.f32.mrb[22].mxu1 }
 0x1e5   : > { %911 = vst [vmem:[%s1768_s9 + $0xa0] sm:$0xff] %v847_v29  ;;  %943 = vst [vmem:[%s1768_s9 + $0x1a0] sm:$0xff] %v879_v30  ;;  %v849_v37 = vadd.f32 %v722_v35, %v1760_v7  ;;  %v881_v38 = vadd.f32 %v802_v36, %v1760_v7  ;;  %v724_v39 = vpop.f32.mrb[23].mxu0  ;;  %v804_v40 = vpop.f32.mrb[23].mxu1 }
 0x1e6   : > { %912 = vst [vmem:[%s1768_s9 + $0xa8] sm:$0xff] %v848_v33  ;;  %944 = vst [vmem:[%s1768_s9 + $0x1a8] sm:$0xff] %v880_v34  ;;  %v850_v41 = vadd.f32 %v724_v39, %v1762_v11  ;;  %v882_v42 = vadd.f32 %v804_v40, %v1762_v11 }
 0x1e7   : > { %913 = vst [vmem:[%s1768_s9 + $0xb0] sm:$0xff] %v849_v37  ;;  %945 = vst [vmem:[%s1768_s9 + $0x1b0] sm:$0xff] %v881_v38 }
 0x1e8   : > { %914 = vst [vmem:[%s1768_s9 + $0xb8] sm:$0xff] %v850_v41  ;;  %946 = vst [vmem:[%s1768_s9 + $0x1b8] sm:$0xff] %v882_v42 }
 0x1ea   : > { %v728_v43 = vpop.f32.mrb[24].mxu0  ;;  %v808_v44 = vpop.f32.mrb[24].mxu1 }
 0x1eb   : > { %v851_v45 = vadd.f32 %v728_v43, %v1760_v7  ;;  %v883_v46 = vadd.f32 %v808_v44, %v1760_v7  ;;  %v730_v47 = vpop.f32.mrb[25].mxu0  ;;  %v810_v48 = vpop.f32.mrb[25].mxu1 }
 0x1ec   : > { %v852_v49 = vadd.f32 %v730_v47, %v1762_v11  ;;  %v884_v50 = vadd.f32 %v810_v48, %v1762_v11  ;;  %v732_v51 = vpop.f32.mrb[26].mxu0  ;;  %v812_v52 = vpop.f32.mrb[26].mxu1 }
 0x1ed   : > { %915 = vst [vmem:[%s1768_s9 + $0xc0] sm:$0xff] %v851_v45  ;;  %947 = vst [vmem:[%s1768_s9 + $0x1c0] sm:$0xff] %v883_v46  ;;  %v853_v53 = vadd.f32 %v732_v51, %v1760_v7  ;;  %v885_v54 = vadd.f32 %v812_v52, %v1760_v7  ;;  %v734_v55 = vpop.f32.mrb[27].mxu0  ;;  %v814_v56 = vpop.f32.mrb[27].mxu1 }
 0x1ee   : > { %916 = vst [vmem:[%s1768_s9 + $0xc8] sm:$0xff] %v852_v49  ;;  %948 = vst [vmem:[%s1768_s9 + $0x1c8] sm:$0xff] %v884_v50  ;;  %v854_v57 = vadd.f32 %v734_v55, %v1762_v11  ;;  %v886_v58 = vadd.f32 %v814_v56, %v1762_v11 }
 0x1ef   : > { %917 = vst [vmem:[%s1768_s9 + $0xd0] sm:$0xff] %v853_v53  ;;  %949 = vst [vmem:[%s1768_s9 + $0x1d0] sm:$0xff] %v885_v54 }
 0x1f0   : > { %918 = vst [vmem:[%s1768_s9 + $0xd8] sm:$0xff] %v854_v57  ;;  %950 = vst [vmem:[%s1768_s9 + $0x1d8] sm:$0xff] %v886_v58 }
 0x1f2   : > { %v738_v59 = vpop.f32.mrb[28].mxu0  ;;  %v818_v60 = vpop.f32.mrb[28].mxu1 }
 0x1f3   : > { %v855_v61 = vadd.f32 %v738_v59, %v1760_v7  ;;  %v887_v62 = vadd.f32 %v818_v60, %v1760_v7  ;;  %v740_v63 = vpop.f32.mrb[29].mxu0  ;;  %v820_v0 = vpop.f32.mrb[29].mxu1 }
 0x1f4   : > { %v856_v1 = vadd.f32 %v740_v63, %v1762_v11  ;;  %v888_v2 = vadd.f32 %v820_v0, %v1762_v11  ;;  %v742_v3 = vpop.f32.mrb[30].mxu0  ;;  %v822_v4 = vpop.f32.mrb[30].mxu1 }
 0x1f5   : > { %919 = vst [vmem:[%s1768_s9 + $0xe0] sm:$0xff] %v855_v61  ;;  %951 = vst [vmem:[%s1768_s9 + $0x1e0] sm:$0xff] %v887_v62  ;;  %v857_v5 = vadd.f32 %v742_v3, %v1760_v7  ;;  %v889_v6 = vadd.f32 %v822_v4, %v1760_v7  ;;  %v744_v8 = vpop.f32.mrb[31].mxu0  ;;  %v824_v9 = vpop.f32.mrb[31].mxu1 }
 0x1f6   : > { %920 = vst [vmem:[%s1768_s9 + $0xe8] sm:$0xff] %v856_v1  ;;  %952 = vst [vmem:[%s1768_s9 + $0x1e8] sm:$0xff] %v888_v2  ;;  %v858_v10 = vadd.f32 %v744_v8, %v1762_v11  ;;  %v890_v12 = vadd.f32 %v824_v9, %v1762_v11 }
 0x1f7   : > { %921 = vst [vmem:[%s1768_s9 + $0xf0] sm:$0xff] %v857_v5  ;;  %953 = vst [vmem:[%s1768_s9 + $0x1f0] sm:$0xff] %v889_v6 }
 0x1f8   : > { %922 = vst [vmem:[%s1768_s9 + $0xf8] sm:$0xff] %v858_v10  ;;  %954 = vst [vmem:[%s1768_s9 + $0x1f8] sm:$0xff] %v890_v12 }
 0x1f9   : > { %1437 = shalt.err (!%p1434_p5)
}
 0x1fa   : > { %s1438_s29 = scalar_lea.hbm %s1891_s26, 8192  ;;  %s1442_s20 = scalar_lea.hbm %s1953_s3, 16384 }
 0x1fb   : > { %p1439_p9 = scmp.ne.s32.totalorder %s1891_s26, %s1438_s29  ;;  %p1443_p3 = scmp.lt.u32.totalorder %s1891_s26, %s1953_s3 }
 0x1fc   : > { %p1444_p7 = scmp.lt.u32.totalorder %s1442_s20, %s1438_s29  ;;  %p1446_p4 = scmp.lt.u32.totalorder %s1438_s29, %s1891_s26 }
 0x1fd   : > { %p1440_p1 = pnand %p1439_p9, %p1638_p10 }
 0x1fe   : > { %p1445_p13 = por %p1444_p7, %p1443_p3 }
 0x1ff   : > { %p1441_p2 = pneg %p1440_p1 }
 0x200   : > { %p1447_p6 = por %p1446_p4, %p1445_p13 }
 0x202   : > { %p1448_p8 = pnand %p1447_p6, %p1441_p2 }
 0x204   : > { %1451 = shalt.err (!%p1448_p8)
}
 0x205   : > { %s1520_s9 = smov 256   ;;  %s1521_s10 = smov 16  }
 0x206   : > { %1156 = dma.vmem_to_hbm [thread:$0]  (%p1638_p10), %s1893_s11, 8192, %s1891_s26, %s956_s7, %s1520_s9, %s1520_s9, %s1521_s10  }
 0x207 PF: > { %s989_s15 = sand.u32 1, %s1490_s12   ;;  %p1971_p12 = scmp.ne.s32.totalorder %s1961_s23, 0 }
 0x208   : > { %p1972_p11 = scmp.ge.s32.totalorder %s1510_s17, 2  ;;  %s990_s18 = scalar_lea.sflag [#allocation4], %s989_s15 }
 0x20a   : > { %p1167_p0 = pnand %p1972_p11, %p1971_p12 }
 0x20c   : > { %1485 = dma.done.wait (!%p1167_p0), %s990_s18, 8192  }
 0x20d   : > { %1487 = vsyncadd (!%p1167_p0), %s990_s18, 4294959104  ;;  %s20_s17 = sadd.s32 1, %s1510_s17   ;;  %s1973_s12 = smov %s1494_s13 }
 0x20e   : > { %p17_p5 = scmp.ge.s32.totalorder %s20_s17, 4   ;;  %s1974_s13 = smov %s1498_s14 }
 0x20f   : > { %s1975_s14 = smov %s1647_s5  ;;  %s1976_s15 = smov %s1506_s16 }
 0x210   : > { %s1977_s16 = smov %s1979_s28  ;;  %19 = sbr.rel (!%p17_p5) target bundleno = 7 (0x7), region = 89 }
 0x217   :  { %995 = vsyncpa [#allocation3], 1 }
 0x218   :  { %997 = vsyncpa [#allocation3 + $0x1], 1 }
 0x219   :  { %998 = vsyncpa [#allocation6], 1 }
 0x21a   :  { %999 = vsyncpa [#allocation4], 1 }
 0x21b   :  { %1001 = vsyncpa [#allocation4 + $0x1], 1 }

</bundles_post_ra>
